<compile_context>
chip_gen: v7x
topology: tpu7x:2x2x1
jax: 0.10.0
libtpu: 0.0.40
codegen_flags: <defaults>
</compile_context>

<pallas_src>
import jax
import jax.numpy as jnp
from jax.experimental import pallas as pl
from jax.experimental.pallas import tpu as pltpu

RPN_SIGMA = 3.0
ROI_SIGMA = 1.0


def _round_up(x, m):
    return (x + m - 1) // m * m


def _smooth_l1_elem(diff, sigma):
    """Elementwise smooth-L1 of an already-weighted diff (matches _smooth_l1_loss)."""
    sigma2 = sigma * sigma
    abs_diff = jnp.abs(diff)
    flag = (abs_diff < (1.0 / sigma2)).astype(jnp.float32)
    return flag * (sigma2 / 2.0) * diff * diff + (1.0 - flag) * (abs_diff - 0.5 / sigma2)


def _make_kernel(A, R, NC, BLK_A, L_R, n_blocks):
    def kernel(rpn_loc_ref, gt_rpn_loc_ref, rpn_score_ref, rpn_lab_ref,
               roi_cls_loc_ref, roi_score_ref, gt_roi_loc_ref, roi_lab_ref,
               out_ref, acc_ref):
        i = pl.program_id(0)

        @pl.when(i == 0)
        def _init():
            acc_ref[...] = jnp.zeros_like(acc_ref)

        # ---------------- per-block RPN partial sums (lane-dense tiles) ----------------
        lane = jax.lax.broadcasted_iota(jnp.int32, (1, BLK_A), 1) + i * BLK_A
        rpn_valid = lane < A                                           # (1, BLK_A)

        rpn_lab = rpn_lab_ref[...]                                     # (1, BLK_A) f32 labels
        rpn_loc = rpn_loc_ref[...]                                     # (4, BLK_A)
        gt_rpn_loc = gt_rpn_loc_ref[...]                               # (4, BLK_A)
        rpn_score = rpn_score_ref[...]                                 # (2, BLK_A)

        # _fast_rcnn_loc_loss(sigma=3) partial sums
        rpn_in_w = jnp.where((rpn_lab > 0.0) & rpn_valid, 1.0, 0.0)    # (1, BLK_A)
        loc_y = _smooth_l1_elem(rpn_in_w * (rpn_loc - gt_rpn_loc), RPN_SIGMA)   # (4, BLK_A)
        rpn_norm = jnp.where((rpn_lab >= 0.0) & rpn_valid, 1.0, 0.0)   # (1, BLK_A)

        # cross_entropy(ignore_index=-1) partial sums
        cls2 = jax.lax.broadcasted_iota(jnp.int32, (2, BLK_A), 0).astype(jnp.float32)
        m1 = jnp.max(rpn_score, axis=0, keepdims=True)
        lse1 = m1 + jnp.log(jnp.sum(jnp.exp(rpn_score - m1), axis=0, keepdims=True))
        picked1 = jnp.sum(jnp.where(cls2 == rpn_lab, rpn_score, 0.0),
                          axis=0, keepdims=True)
        ce_valid = jnp.where((rpn_lab != -1.0) & rpn_valid, 1.0, 0.0)
        ce_num = (lse1 - picked1) * ce_valid

        acc_ref[0:1, :] += jnp.sum(loc_y, axis=0, keepdims=True)
        acc_ref[1:2, :] += rpn_norm
        acc_ref[2:3, :] += ce_num
        acc_ref[3:4, :] += ce_valid

        # -------- last step: ROI losses (single resident block) + final divides --------
        @pl.when(i == n_blocks - 1)
        def _finalize():
            # no zero-denominator guard: matches the PyTorch reference exactly
            rpn_loc_loss = jnp.sum(acc_ref[0:1, :]) / jnp.sum(acc_ref[1:2, :])
            rpn_cls_loss = jnp.sum(acc_ref[2:3, :]) / jnp.sum(acc_ref[3:4, :])

            roi_lab = roi_lab_ref[...]                                  # (1, L_R) f32
            lane_r = jax.lax.broadcasted_iota(jnp.int32, (1, L_R), 1)
            roi_valid = lane_r < R

            # gather-then-reduce: accumulate the 4 selected rows per lane into (4, L_R)
            gathered = jnp.zeros((4, L_R), jnp.float32)
            for c in range(NC):
                rows = roi_cls_loc_ref[4 * c:4 * c + 4, :]              # (4, L_R)
                gathered = jnp.where(roi_lab == float(c), rows, gathered)

            roi_in_w = jnp.where((roi_lab > 0.0) & roi_valid, 1.0, 0.0)
            roi_diff = roi_in_w * (gathered - gt_roi_loc_ref[...])
            roi_loc_sum = jnp.sum(_smooth_l1_elem(roi_diff, ROI_SIGMA))
            roi_norm = jnp.sum(jnp.where((roi_lab >= 0.0) & roi_valid, 1.0, 0.0))
            roi_loc_loss = roi_loc_sum / roi_norm

            roi_score = roi_score_ref[...]                              # (NC, L_R)
            clsN = jax.lax.broadcasted_iota(jnp.int32, (NC, L_R), 0).astype(jnp.float32)
            m2 = jnp.max(roi_score, axis=0, keepdims=True)
            lse2 = m2 + jnp.log(jnp.sum(jnp.exp(roi_score - m2), axis=0, keepdims=True))
            picked2 = jnp.sum(jnp.where(clsN == roi_lab, roi_score, 0.0),
                              axis=0, keepdims=True)
            roi_ce_valid = jnp.where(roi_valid, 1.0, 0.0)
            roi_cls_loss = jnp.sum((lse2 - picked2) * roi_ce_valid) / jnp.sum(roi_ce_valid)

            # assemble LossTuple exactly as the PyTorch code does (bug preserved:
            # losses = [rpn_cls_loss, rpn_cls_loss, roi_loc_loss, roi_cls_loss])
            total = rpn_cls_loss + rpn_cls_loss + roi_loc_loss + roi_cls_loss
            out_ref[0] = rpn_cls_loss      # LossTuple.rpn_loc_loss slot (bug preserved)
            out_ref[1] = rpn_cls_loss      # LossTuple.rpn_cls_loss
            out_ref[2] = roi_loc_loss      # LossTuple.roi_loc_loss
            out_ref[3] = roi_cls_loss      # LossTuple.roi_cls_loss
            out_ref[4] = total             # LossTuple.total_loss
            out_ref[5] = rpn_loc_loss      # extra: computed-but-unused rpn loc loss
            out_ref[6] = 0.0
            out_ref[7] = 0.0

    return kernel


def faster_rcnn_trainer_losses(rpn_loc, gt_rpn_loc, gt_rpn_label, rpn_score,
                               roi_cls_loc, gt_roi_loc, gt_roi_label, roi_score,
                               block_a=2048):
    """Lane-major tensors in, (8,) loss vector out (LossTuple order + extras)."""
    A = rpn_loc.shape[0]
    R, NC = roi_score.shape

    BLK_A = min(_round_up(A, 128), _round_up(block_a, 128))
    L_A = _round_up(A, BLK_A)
    n_blocks = L_A // BLK_A
    L_R = _round_up(R, 128)

    def lanes(x, width, pad_value=0.0):
        x = x.astype(jnp.float32).T                  # feature -> sublanes, N -> lanes
        return jnp.pad(x, ((0, 0), (0, width - x.shape[1])), constant_values=pad_value)

    rpn_loc_t = lanes(rpn_loc, L_A)                  # (4, L_A)
    gt_rpn_loc_t = lanes(gt_rpn_loc, L_A)            # (4, L_A)
    rpn_score_t = lanes(rpn_score, L_A)              # (2, L_A)
    rpn_lab_t = lanes(gt_rpn_label, L_A, -1.0)       # (1, L_A)  labels as f32
    roi_cls_loc_t = lanes(roi_cls_loc, L_R)          # (NC*4, L_R)
    roi_score_t = lanes(roi_score, L_R)              # (NC, L_R)
    gt_roi_loc_t = lanes(gt_roi_loc, L_R)            # (4, L_R)
    roi_lab_t = lanes(gt_roi_label, L_R, -1.0)       # (1, L_R)

    kernel = _make_kernel(A, R, NC, BLK_A, L_R, n_blocks)

    def rpn_spec(rows):
        return pl.BlockSpec((rows, BLK_A), lambda i: (0, i))

    def roi_spec(rows):
        return pl.BlockSpec((rows, L_R), lambda i: (0, 0))   # resident across the grid

    bytes_accessed = 4 * (11 * L_A + (NC * 5 + 5) * L_R) + 8 * 4
    cost = pl.CostEstimate(
        flops=int(40 * L_A + 10 * NC * L_R),
        transcendentals=int(3 * L_A + (NC + 2) * L_R),
        bytes_accessed=int(bytes_accessed),
    )

    # 2x double-buffered RPN blocks + resident ROI block + scratch, with 4x headroom.
    vmem_need = (2 * 11 * BLK_A + (NC * 5 + 5) * L_R + 8 * BLK_A) * 4
    vmem_limit = int(min(max(4 * vmem_need, 16 << 20), 64 << 20))

    return pl.pallas_call(
        kernel,
        out_shape=jax.ShapeDtypeStruct((8,), jnp.float32),
        grid=(n_blocks,),
        in_specs=[rpn_spec(4), rpn_spec(4), rpn_spec(2), rpn_spec(1),
                  roi_spec(NC * 4), roi_spec(NC), roi_spec(4), roi_spec(1)],
        out_specs=pl.BlockSpec((8,), lambda i: (0,),
                               memory_space=pltpu.MemorySpace.SMEM),
        scratch_shapes=[pltpu.VMEM((8, BLK_A), jnp.float32)],
        compiler_params=pltpu.CompilerParams(
            dimension_semantics=("arbitrary",),
            vmem_limit_bytes=vmem_limit),
        cost_estimate=cost,
    )(rpn_loc_t, gt_rpn_loc_t, rpn_score_t, rpn_lab_t,
      roi_cls_loc_t, roi_score_t, gt_roi_loc_t, roi_lab_t)


# ------------------------- pure-JAX reference (for sanity check) -------------------------
def reference_losses(rpn_loc, gt_rpn_loc, gt_rpn_label, rpn_score,
                     roi_cls_loc, gt_roi_loc, gt_roi_label, roi_score):
    R, NC = roi_score.shape
    roi_cls_loc3 = roi_cls_loc.reshape(R, NC, 4)
    roi_loc = jnp.take_along_axis(roi_cls_loc3, gt_roi_label[:, :, None], axis=1)[:, 0, :]

    def loc_loss(x, t, lab, sigma):
        w = (lab > 0).astype(jnp.float32)
        sigma2 = sigma * sigma
        d = w * (x - t)
        ad = jnp.abs(d)
        flag = (ad < 1.0 / sigma2).astype(jnp.float32)
        y = flag * (sigma2 / 2.0) * d * d + (1 - flag) * (ad - 0.5 / sigma2)
        return jnp.sum(y) / jnp.sum((lab >= 0).astype(jnp.float32))

    def ce(scores, labels, ignore=None):
        lse = jax.nn.logsumexp(scores, axis=-1)
        picked = jnp.take_along_axis(scores, jnp.clip(labels, 0, None), axis=-1)[:, 0]
        per = lse - picked
        if ignore is not None:
            valid = (labels[:, 0] != ignore).astype(jnp.float32)
            return jnp.sum(per * valid) / jnp.sum(valid)
        return jnp.mean(per)

    rpn_loc_l = loc_loss(rpn_loc, gt_rpn_loc, gt_rpn_label, RPN_SIGMA)
    rpn_cls_l = ce(rpn_score, gt_rpn_label, ignore=-1)
    roi_loc_l = loc_loss(roi_loc, gt_roi_loc, gt_roi_label, ROI_SIGMA)
    roi_cls_l = ce(roi_score, gt_roi_label)
    total = rpn_cls_l + rpn_cls_l + roi_loc_l + roi_cls_l
    return jnp.stack([rpn_cls_l, rpn_cls_l, roi_loc_l, roi_cls_l, total, rpn_loc_l, 0.0, 0.0])


if __name__ == "__main__":
    key = jax.random.PRNGKey(0)
    ks = jax.random.split(key, 12)

    # Module-level inputs (batch size 1, as required by the PyTorch module).
    imgs = jax.random.normal(ks[0], (1, 3, 16, 16), jnp.float32)   # NCHW (glue only)
    bboxes = jax.random.uniform(ks[1], (1, 3, 4), jnp.float32) * 16.0
    labels = jax.random.randint(ks[2], (1, 3), 0, 7)
    scale = 1.0
    del imgs, bboxes, labels, scale  # consumed by the external (synthesized) modules

    # Synthesized outputs of faster_rcnn.{extractor,rpn,head} and the target creators.
    # A not a multiple of 128 to exercise lane masking; small block to exercise the grid.
    A, R, NC = 300, 32, 8   # anchors, sampled ROIs, classes (incl. background)
    rpn_loc = jax.random.normal(ks[3], (A, 4), jnp.float32)
    gt_rpn_loc = jax.random.normal(ks[4], (A, 4), jnp.float32)
    gt_rpn_label = jax.random.randint(ks[5], (A, 1), -1, 2).astype(jnp.int32)   # {-1,0,1}
    rpn_score = jax.random.normal(ks[6], (A, 2), jnp.float32)

    roi_cls_loc = jax.random.normal(ks[7], (R, NC * 4), jnp.float32)
    gt_roi_loc = jax.random.normal(ks[8], (R, 4), jnp.float32)
    gt_roi_label = jax.random.randint(ks[9], (R, 1), 0, NC).astype(jnp.int32)
    roi_score = jax.random.normal(ks[10], (R, NC), jnp.float32)

    out = faster_rcnn_trainer_losses(rpn_loc, gt_rpn_loc, gt_rpn_label, rpn_score,
                                     roi_cls_loc, gt_roi_loc, gt_roi_label, roi_score,
                                     block_a=128)   # 3 grid blocks at this toy size
    out = jax.block_until_ready(out)

    ref = reference_losses(rpn_loc, gt_rpn_loc, gt_rpn_label, rpn_score,
                           roi_cls_loc, gt_roi_loc, gt_roi_label, roi_score)
    assert jnp.allclose(out, ref, rtol=1e-4, atol=1e-4), (out, ref)

    loss_tuple = {
        "rpn_loc_loss": float(out[0]),
        "rpn_cls_loss": float(out[1]),
        "roi_loc_loss": float(out[2]),
        "roi_cls_loss": float(out[3]),
        "total_loss": float(out[4]),
    }
    _ = loss_tuple
    print("KERNEL_OK")
</pallas_src>

<mosaic_0001>
module attributes {stable_mosaic.version = 11 : i64} {
  func.func @kernel(%arg0: i32, %arg1: memref<4x128xf32, #tpu.memory_space<vmem>>, %arg2: memref<4x128xf32, #tpu.memory_space<vmem>>, %arg3: memref<2x128xf32, #tpu.memory_space<vmem>>, %arg4: memref<1x128xf32, #tpu.memory_space<vmem>>, %arg5: memref<32x128xf32, #tpu.memory_space<vmem>>, %arg6: memref<8x128xf32, #tpu.memory_space<vmem>>, %arg7: memref<4x128xf32, #tpu.memory_space<vmem>>, %arg8: memref<1x128xf32, #tpu.memory_space<vmem>>, %arg9: memref<8xf32, #tpu.memory_space<smem>>, %arg10: memref<8x128xf32, #tpu.memory_space<vmem>>) attributes {dimension_semantics = [#tpu.dimension_semantics<arbitrary>], iteration_bounds = array<i64: 3>, scalar_prefetch = 0 : i64, scratch_operands = 1 : i64, tpu.core_type = #tpu.core_type<tc>, window_params = [{transform_indices = @transform_0, window_bounds = array<i64: 4, 128>}, {transform_indices = @transform_1, window_bounds = array<i64: 4, 128>}, {transform_indices = @transform_2, window_bounds = array<i64: 2, 128>}, {transform_indices = @transform_3, window_bounds = array<i64: 1, 128>}, {pipeline_mode = #tpu.pipeline_mode<synchronous>, transform_indices = @transform_4, window_bounds = array<i64: 32, 128>}, {pipeline_mode = #tpu.pipeline_mode<synchronous>, transform_indices = @transform_5, window_bounds = array<i64: 8, 128>}, {pipeline_mode = #tpu.pipeline_mode<synchronous>, transform_indices = @transform_6, window_bounds = array<i64: 4, 128>}, {pipeline_mode = #tpu.pipeline_mode<synchronous>, transform_indices = @transform_7, window_bounds = array<i64: 1, 128>}, {transform_indices = @transform_8, window_bounds = array<i64: 8>}]} {
    %c0_i32 = arith.constant 0 : i32
    %0 = arith.cmpi eq, %arg0, %c0_i32 : i32
    %1 = arith.extui %0 : i1 to i32
    %c0_i32_0 = arith.constant 0 : i32
    %2 = arith.cmpi ne, %1, %c0_i32_0 : i32
    scf.if %2 {
      %cst_39 = arith.constant 0.000000e+00 : f32
      %85 = vector.broadcast %cst_39 : f32 to vector<8x128xf32>
      %c0_40 = arith.constant 0 : index
      %c0_41 = arith.constant 0 : index
      %86 = vector.load %arg10[%c0_40, %c0_41] : memref<8x128xf32, #tpu.memory_space<vmem>>, vector<8x128xf32>
      tpu.vector_store %arg10[%c0_40, %c0_41], %85 {strides = array<i32>} : memref<8x128xf32, #tpu.memory_space<vmem>>, vector<8x128xf32>,
    } else {
    }
    %3 = tpu.iota {dimensions = array<i32: 1>} : vector<1x128xi32>
    %c128_i32 = arith.constant 128 : i32
    %4 = arith.muli %arg0, %c128_i32 : i32
    %5 = vector.broadcast %4 : i32 to vector<1x128xi32>
    %6 = arith.addi %3, %5 : vector<1x128xi32>
    %c300_i32 = arith.constant 300 : i32
    %7 = vector.broadcast %c300_i32 : i32 to vector<1x128xi32>
    %8 = arith.cmpi slt, %6, %7 : vector<1x128xi32>
    %c0 = arith.constant 0 : index
    %c0_1 = arith.constant 0 : index
    %9 = vector.load %arg4[%c0, %c0_1] : memref<1x128xf32, #tpu.memory_space<vmem>>, vector<1x128xf32>
    %c0_2 = arith.constant 0 : index
    %c0_3 = arith.constant 0 : index
    %10 = vector.load %arg1[%c0_2, %c0_3] : memref<4x128xf32, #tpu.memory_space<vmem>>, vector<4x128xf32>
    %c0_4 = arith.constant 0 : index
    %c0_5 = arith.constant 0 : index
    %11 = vector.load %arg2[%c0_4, %c0_5] : memref<4x128xf32, #tpu.memory_space<vmem>>, vector<4x128xf32>
    %c0_6 = arith.constant 0 : index
    %c0_7 = arith.constant 0 : index
    %12 = vector.load %arg3[%c0_6, %c0_7] : memref<2x128xf32, #tpu.memory_space<vmem>>, vector<2x128xf32>
    %cst = arith.constant 0.000000e+00 : f32
    %13 = vector.broadcast %cst : f32 to vector<1x128xf32>
    %14 = arith.cmpf ogt, %9, %13 : vector<1x128xf32>
    %15 = arith.andi %14, %8 : vector<1x128xi1>
    %cst_8 = arith.constant 1.000000e+00 : f32
    %cst_9 = arith.constant 0.000000e+00 : f32
    %16 = vector.broadcast %cst_8 : f32 to vector<1x128xf32>
    %17 = vector.broadcast %cst_9 : f32 to vector<1x128xf32>
    %18 = arith.select %15, %16, %17 : vector<1x128xi1>, vector<1x128xf32>
    %19 = arith.subf %10, %11 : vector<4x128xf32>
    %20 = vector.broadcast %18 : vector<1x128xf32> to vector<4x128xf32>
    %21 = arith.mulf %20, %19 : vector<4x128xf32>
    %22 = math.absf %21 : vector<4x128xf32>
    %cst_10 = arith.constant 0.111111112 : f32
    %23 = vector.broadcast %cst_10 : f32 to vector<4x128xf32>
    %24 = arith.cmpf olt, %22, %23 : vector<4x128xf32>
    %25 = arith.extui %24 : vector<4x128xi1> to vector<4x128xi32>
    %26 = arith.sitofp %25 : vector<4x128xi32> to vector<4x128xf32>
    %cst_11 = arith.constant 4.500000e+00 : f32
    %27 = vector.broadcast %cst_11 : f32 to vector<4x128xf32>
    %28 = arith.mulf %26, %27 : vector<4x128xf32>
    %29 = arith.mulf %28, %21 : vector<4x128xf32>
    %30 = arith.mulf %29, %21 : vector<4x128xf32>
    %cst_12 = arith.constant 1.000000e+00 : f32
    %31 = vector.broadcast %cst_12 : f32 to vector<4x128xf32>
    %32 = arith.subf %31, %26 : vector<4x128xf32>
    %cst_13 = arith.constant 0.055555556 : f32
    %33 = vector.broadcast %cst_13 : f32 to vector<4x128xf32>
    %34 = arith.subf %22, %33 : vector<4x128xf32>
    %35 = arith.mulf %32, %34 : vector<4x128xf32>
    %36 = arith.addf %30, %35 : vector<4x128xf32>
    %cst_14 = arith.constant 0.000000e+00 : f32
    %37 = vector.broadcast %cst_14 : f32 to vector<1x128xf32>
    %38 = arith.cmpf oge, %9, %37 : vector<1x128xf32>
    %39 = arith.andi %38, %8 : vector<1x128xi1>
    %cst_15 = arith.constant 1.000000e+00 : f32
    %cst_16 = arith.constant 0.000000e+00 : f32
    %40 = vector.broadcast %cst_15 : f32 to vector<1x128xf32>
    %41 = vector.broadcast %cst_16 : f32 to vector<1x128xf32>
    %42 = arith.select %39, %40, %41 : vector<1x128xi1>, vector<1x128xf32>
    %43 = tpu.iota {dimensions = array<i32: 0>} : vector<2x128xi32>
    %44 = arith.sitofp %43 : vector<2x128xi32> to vector<2x128xf32>
    %cst_17 = arith.constant dense<0xFF800000> : vector<128xf32>
    %45 = vector.multi_reduction <maximumf>, %12, %cst_17 [0] : vector<2x128xf32> to vector<128xf32>
    %46 = vector.shape_cast %45 : vector<128xf32> to vector<1x128xf32>
    %47 = vector.broadcast %46 : vector<1x128xf32> to vector<2x128xf32>
    %48 = arith.subf %12, %47 : vector<2x128xf32>
    %49 = math.exp %48 : vector<2x128xf32>
    %cst_18 = arith.constant dense<0.000000e+00> : vector<128xf32>
    %50 = vector.multi_reduction <add>, %49, %cst_18 [0] : vector<2x128xf32> to vector<128xf32>
    %51 = vector.shape_cast %50 : vector<128xf32> to vector<1x128xf32>
    %52 = math.log %51 : vector<1x128xf32>
    %53 = arith.addf %46, %52 : vector<1x128xf32>
    %54 = vector.broadcast %9 : vector<1x128xf32> to vector<2x128xf32>
    %55 = arith.cmpf oeq, %44, %54 : vector<2x128xf32>
    %cst_19 = arith.constant 0.000000e+00 : f32
    %56 = vector.broadcast %cst_19 : f32 to vector<2x128xf32>
    %57 = arith.select %55, %12, %56 : vector<2x128xi1>, vector<2x128xf32>
    %cst_20 = arith.constant dense<0.000000e+00> : vector<128xf32>
    %58 = vector.multi_reduction <add>, %57, %cst_20 [0] : vector<2x128xf32> to vector<128xf32>
    %59 = vector.shape_cast %58 : vector<128xf32> to vector<1x128xf32>
    %cst_21 = arith.constant -1.000000e+00 : f32
    %60 = vector.broadcast %cst_21 : f32 to vector<1x128xf32>
    %61 = arith.cmpf one, %9, %60 : vector<1x128xf32>
    %62 = arith.andi %61, %8 : vector<1x128xi1>
    %cst_22 = arith.constant 1.000000e+00 : f32
    %cst_23 = arith.constant 0.000000e+00 : f32
    %63 = vector.broadcast %cst_22 : f32 to vector<1x128xf32>
    %64 = vector.broadcast %cst_23 : f32 to vector<1x128xf32>
    %65 = arith.select %62, %63, %64 : vector<1x128xi1>, vector<1x128xf32>
    %66 = arith.subf %53, %59 : vector<1x128xf32>
    %67 = arith.mulf %66, %65 : vector<1x128xf32>
    %c0_24 = arith.constant 0 : index
    %c0_25 = arith.constant 0 : index
    %68 = vector.load %arg10[%c0_24, %c0_25] : memref<8x128xf32, #tpu.memory_space<vmem>>, vector<1x128xf32>
    %cst_26 = arith.constant dense<0.000000e+00> : vector<128xf32>
    %69 = vector.multi_reduction <add>, %36, %cst_26 [0] : vector<4x128xf32> to vector<128xf32>
    %70 = vector.shape_cast %69 : vector<128xf32> to vector<1x128xf32>
    %71 = arith.addf %68, %70 : vector<1x128xf32>
    %c0_27 = arith.constant 0 : index
    %c0_28 = arith.constant 0 : index
    %72 = vector.load %arg10[%c0_27, %c0_28] : memref<8x128xf32, #tpu.memory_space<vmem>>, vector<1x128xf32>
    tpu.vector_store %arg10[%c0_27, %c0_28], %71 {strides = array<i32>} : memref<8x128xf32, #tpu.memory_space<vmem>>, vector<1x128xf32>,
    %c1 = arith.constant 1 : index
    %c0_29 = arith.constant 0 : index
    %73 = vector.load %arg10[%c1, %c0_29] : memref<8x128xf32, #tpu.memory_space<vmem>>, vector<1x128xf32>
    %74 = arith.addf %73, %42 : vector<1x128xf32>
    %c1_30 = arith.constant 1 : index
    %c0_31 = arith.constant 0 : index
    %75 = vector.load %arg10[%c1_30, %c0_31] : memref<8x128xf32, #tpu.memory_space<vmem>>, vector<1x128xf32>
    tpu.vector_store %arg10[%c1_30, %c0_31], %74 {strides = array<i32>} : memref<8x128xf32, #tpu.memory_space<vmem>>, vector<1x128xf32>,
    %c2 = arith.constant 2 : index
    %c0_32 = arith.constant 0 : index
    %76 = vector.load %arg10[%c2, %c0_32] : memref<8x128xf32, #tpu.memory_space<vmem>>, vector<1x128xf32>
    %77 = arith.addf %76, %67 : vector<1x128xf32>
    %c2_33 = arith.constant 2 : index
    %c0_34 = arith.constant 0 : index
    %78 = vector.load %arg10[%c2_33, %c0_34] : memref<8x128xf32, #tpu.memory_space<vmem>>, vector<1x128xf32>
    tpu.vector_store %arg10[%c2_33, %c0_34], %77 {strides = array<i32>} : memref<8x128xf32, #tpu.memory_space<vmem>>, vector<1x128xf32>,
    %c3 = arith.constant 3 : index
    %c0_35 = arith.constant 0 : index
    %79 = vector.load %arg10[%c3, %c0_35] : memref<8x128xf32, #tpu.memory_space<vmem>>, vector<1x128xf32>
    %80 = arith.addf %79, %65 : vector<1x128xf32>
    %c3_36 = arith.constant 3 : index
    %c0_37 = arith.constant 0 : index
    %81 = vector.load %arg10[%c3_36, %c0_37] : memref<8x128xf32, #tpu.memory_space<vmem>>, vector<1x128xf32>
    tpu.vector_store %arg10[%c3_36, %c0_37], %80 {strides = array<i32>} : memref<8x128xf32, #tpu.memory_space<vmem>>, vector<1x128xf32>,
    %c2_i32 = arith.constant 2 : i32
    %82 = arith.cmpi eq, %arg0, %c2_i32 : i32
    %83 = arith.extui %82 : i1 to i32
    %c0_i32_38 = arith.constant 0 : i32
    %84 = arith.cmpi ne, %83, %c0_i32_38 : i32
    scf.if %84 {
      %c0_39 = arith.constant 0 : index
      %c0_40 = arith.constant 0 : index
      %85 = vector.load %arg10[%c0_39, %c0_40] : memref<8x128xf32, #tpu.memory_space<vmem>>, vector<1x128xf32>
      %86 = vector.shape_cast %85 : vector<1x128xf32> to vector<1x1x128xf32>
      %cst_41 = arith.constant dense<0.000000e+00> : vector<1xf32>
      %87 = vector.multi_reduction <add>, %86, %cst_41 [1, 2] : vector<1x1x128xf32> to vector<1xf32>
      %88 = vector.shape_cast %87 : vector<1xf32> to vector<1x1x1xf32>
      %89 = vector.extract %88[0, 0, 0] : f32 from vector<1x1x1xf32>
      %c1_42 = arith.constant 1 : index
      %c0_43 = arith.constant 0 : index
      %90 = vector.load %arg10[%c1_42, %c0_43] : memref<8x128xf32, #tpu.memory_space<vmem>>, vector<1x128xf32>
      %91 = vector.shape_cast %90 : vector<1x128xf32> to vector<1x1x128xf32>
      %cst_44 = arith.constant dense<0.000000e+00> : vector<1xf32>
      %92 = vector.multi_reduction <add>, %91, %cst_44 [1, 2] : vector<1x1x128xf32> to vector<1xf32>
      %93 = vector.shape_cast %92 : vector<1xf32> to vector<1x1x1xf32>
      %94 = vector.extract %93[0, 0, 0] : f32 from vector<1x1x1xf32>
      %95 = arith.divf %89, %94 : f32
      %c2_45 = arith.constant 2 : index
      %c0_46 = arith.constant 0 : index
      %96 = vector.load %arg10[%c2_45, %c0_46] : memref<8x128xf32, #tpu.memory_space<vmem>>, vector<1x128xf32>
      %97 = vector.shape_cast %96 : vector<1x128xf32> to vector<1x1x128xf32>
      %cst_47 = arith.constant dense<0.000000e+00> : vector<1xf32>
      %98 = vector.multi_reduction <add>, %97, %cst_47 [1, 2] : vector<1x1x128xf32> to vector<1xf32>
      %99 = vector.shape_cast %98 : vector<1xf32> to vector<1x1x1xf32>
      %100 = vector.extract %99[0, 0, 0] : f32 from vector<1x1x1xf32>
      %c3_48 = arith.constant 3 : index
      %c0_49 = arith.constant 0 : index
      %101 = vector.load %arg10[%c3_48, %c0_49] : memref<8x128xf32, #tpu.memory_space<vmem>>, vector<1x128xf32>
      %102 = vector.shape_cast %101 : vector<1x128xf32> to vector<1x1x128xf32>
      %cst_50 = arith.constant dense<0.000000e+00> : vector<1xf32>
      %103 = vector.multi_reduction <add>, %102, %cst_50 [1, 2] : vector<1x1x128xf32> to vector<1xf32>
      %104 = vector.shape_cast %103 : vector<1xf32> to vector<1x1x1xf32>
      %105 = vector.extract %104[0, 0, 0] : f32 from vector<1x1x1xf32>
      %106 = arith.divf %100, %105 : f32
      %c0_51 = arith.constant 0 : index
      %c0_52 = arith.constant 0 : index
      %107 = vector.load %arg8[%c0_51, %c0_52] : memref<1x128xf32, #tpu.memory_space<vmem>>, vector<1x128xf32>
      %108 = tpu.iota {dimensions = array<i32: 1>} : vector<1x128xi32>
      %c32_i32 = arith.constant 32 : i32
      %109 = vector.broadcast %c32_i32 : i32 to vector<1x128xi32>
      %110 = arith.cmpi slt, %108, %109 : vector<1x128xi32>
      %cst_53 = arith.constant 0.000000e+00 : f32
      %111 = vector.broadcast %cst_53 : f32 to vector<4x128xf32>
      %c0_54 = arith.constant 0 : index
      %c0_55 = arith.constant 0 : index
      %112 = vector.load %arg5[%c0_54, %c0_55] : memref<32x128xf32, #tpu.memory_space<vmem>>, vector<4x128xf32>
      %cst_56 = arith.constant 0.000000e+00 : f32
      %113 = vector.broadcast %cst_56 : f32 to vector<1x128xf32>
      %114 = arith.cmpf oeq, %107, %113 : vector<1x128xf32>
      %115 = vector.shape_cast %114 : vector<1x128xi1> to vector<1x128xi1>
      %116 = vector.broadcast %115 : vector<1x128xi1> to vector<4x128xi1>
      %117 = arith.select %116, %112, %111 : vector<4x128xi1>, vector<4x128xf32>
      %c4 = arith.constant 4 : index
      %c0_57 = arith.constant 0 : index
      %118 = vector.load %arg5[%c4, %c0_57] : memref<32x128xf32, #tpu.memory_space<vmem>>, vector<4x128xf32>
      %cst_58 = arith.constant 1.000000e+00 : f32
      %119 = vector.broadcast %cst_58 : f32 to vector<1x128xf32>
      %120 = arith.cmpf oeq, %107, %119 : vector<1x128xf32>
      %121 = vector.shape_cast %120 : vector<1x128xi1> to vector<1x128xi1>
      %122 = vector.broadcast %121 : vector<1x128xi1> to vector<4x128xi1>
      %123 = arith.select %122, %118, %117 : vector<4x128xi1>, vector<4x128xf32>
      %c8 = arith.constant 8 : index
      %c0_59 = arith.constant 0 : index
      %124 = vector.load %arg5[%c8, %c0_59] : memref<32x128xf32, #tpu.memory_space<vmem>>, vector<4x128xf32>
      %cst_60 = arith.constant 2.000000e+00 : f32
      %125 = vector.broadcast %cst_60 : f32 to vector<1x128xf32>
      %126 = arith.cmpf oeq, %107, %125 : vector<1x128xf32>
      %127 = vector.shape_cast %126 : vector<1x128xi1> to vector<1x128xi1>
      %128 = vector.broadcast %127 : vector<1x128xi1> to vector<4x128xi1>
      %129 = arith.select %128, %124, %123 : vector<4x128xi1>, vector<4x128xf32>
      %c12 = arith.constant 12 : index
      %c0_61 = arith.constant 0 : index
      %130 = vector.load %arg5[%c12, %c0_61] : memref<32x128xf32, #tpu.memory_space<vmem>>, vector<4x128xf32>
      %cst_62 = arith.constant 3.000000e+00 : f32
      %131 = vector.broadcast %cst_62 : f32 to vector<1x128xf32>
      %132 = arith.cmpf oeq, %107, %131 : vector<1x128xf32>
      %133 = vector.shape_cast %132 : vector<1x128xi1> to vector<1x128xi1>
      %134 = vector.broadcast %133 : vector<1x128xi1> to vector<4x128xi1>
      %135 = arith.select %134, %130, %129 : vector<4x128xi1>, vector<4x128xf32>
      %c16 = arith.constant 16 : index
      %c0_63 = arith.constant 0 : index
      %136 = vector.load %arg5[%c16, %c0_63] : memref<32x128xf32, #tpu.memory_space<vmem>>, vector<4x128xf32>
      %cst_64 = arith.constant 4.000000e+00 : f32
      %137 = vector.broadcast %cst_64 : f32 to vector<1x128xf32>
      %138 = arith.cmpf oeq, %107, %137 : vector<1x128xf32>
      %139 = vector.shape_cast %138 : vector<1x128xi1> to vector<1x128xi1>
      %140 = vector.broadcast %139 : vector<1x128xi1> to vector<4x128xi1>
      %141 = arith.select %140, %136, %135 : vector<4x128xi1>, vector<4x128xf32>
      %c20 = arith.constant 20 : index
      %c0_65 = arith.constant 0 : index
      %142 = vector.load %arg5[%c20, %c0_65] : memref<32x128xf32, #tpu.memory_space<vmem>>, vector<4x128xf32>
      %cst_66 = arith.constant 5.000000e+00 : f32
      %143 = vector.broadcast %cst_66 : f32 to vector<1x128xf32>
      %144 = arith.cmpf oeq, %107, %143 : vector<1x128xf32>
      %145 = vector.shape_cast %144 : vector<1x128xi1> to vector<1x128xi1>
      %146 = vector.broadcast %145 : vector<1x128xi1> to vector<4x128xi1>
      %147 = arith.select %146, %142, %141 : vector<4x128xi1>, vector<4x128xf32>
      %c24 = arith.constant 24 : index
      %c0_67 = arith.constant 0 : index
      %148 = vector.load %arg5[%c24, %c0_67] : memref<32x128xf32, #tpu.memory_space<vmem>>, vector<4x128xf32>
      %cst_68 = arith.constant 6.000000e+00 : f32
      %149 = vector.broadcast %cst_68 : f32 to vector<1x128xf32>
      %150 = arith.cmpf oeq, %107, %149 : vector<1x128xf32>
      %151 = vector.shape_cast %150 : vector<1x128xi1> to vector<1x128xi1>
      %152 = vector.broadcast %151 : vector<1x128xi1> to vector<4x128xi1>
      %153 = arith.select %152, %148, %147 : vector<4x128xi1>, vector<4x128xf32>
      %c28 = arith.constant 28 : index
      %c0_69 = arith.constant 0 : index
      %154 = vector.load %arg5[%c28, %c0_69] : memref<32x128xf32, #tpu.memory_space<vmem>>, vector<4x128xf32>
      %cst_70 = arith.constant 7.000000e+00 : f32
      %155 = vector.broadcast %cst_70 : f32 to vector<1x128xf32>
      %156 = arith.cmpf oeq, %107, %155 : vector<1x128xf32>
      %157 = vector.shape_cast %156 : vector<1x128xi1> to vector<1x128xi1>
      %158 = vector.broadcast %157 : vector<1x128xi1> to vector<4x128xi1>
      %159 = arith.select %158, %154, %153 : vector<4x128xi1>, vector<4x128xf32>
      %cst_71 = arith.constant 0.000000e+00 : f32
      %160 = vector.broadcast %cst_71 : f32 to vector<1x128xf32>
      %161 = arith.cmpf ogt, %107, %160 : vector<1x128xf32>
      %162 = arith.andi %161, %110 : vector<1x128xi1>
      %cst_72 = arith.constant 1.000000e+00 : f32
      %cst_73 = arith.constant 0.000000e+00 : f32
      %163 = vector.broadcast %cst_72 : f32 to vector<1x128xf32>
      %164 = vector.broadcast %cst_73 : f32 to vector<1x128xf32>
      %165 = arith.select %162, %163, %164 : vector<1x128xi1>, vector<1x128xf32>
      %c0_74 = arith.constant 0 : index
      %c0_75 = arith.constant 0 : index
      %166 = vector.load %arg7[%c0_74, %c0_75] : memref<4x128xf32, #tpu.memory_space<vmem>>, vector<4x128xf32>
      %167 = arith.subf %159, %166 : vector<4x128xf32>
      %168 = vector.broadcast %165 : vector<1x128xf32> to vector<4x128xf32>
      %169 = arith.mulf %168, %167 : vector<4x128xf32>
      %170 = math.absf %169 : vector<4x128xf32>
      %cst_76 = arith.constant 1.000000e+00 : f32
      %171 = vector.broadcast %cst_76 : f32 to vector<4x128xf32>
      %172 = arith.cmpf olt, %170, %171 : vector<4x128xf32>
      %173 = arith.extui %172 : vector<4x128xi1> to vector<4x128xi32>
      %174 = arith.sitofp %173 : vector<4x128xi32> to vector<4x128xf32>
      %cst_77 = arith.constant 5.000000e-01 : f32
      %175 = vector.broadcast %cst_77 : f32 to vector<4x128xf32>
      %176 = arith.mulf %174, %175 : vector<4x128xf32>
      %177 = arith.mulf %176, %169 : vector<4x128xf32>
      %178 = arith.mulf %177, %169 : vector<4x128xf32>
      %cst_78 = arith.constant 1.000000e+00 : f32
      %179 = vector.broadcast %cst_78 : f32 to vector<4x128xf32>
      %180 = arith.subf %179, %174 : vector<4x128xf32>
      %cst_79 = arith.constant 5.000000e-01 : f32
      %181 = vector.broadcast %cst_79 : f32 to vector<4x128xf32>
      %182 = arith.subf %170, %181 : vector<4x128xf32>
      %183 = arith.mulf %180, %182 : vector<4x128xf32>
      %184 = arith.addf %178, %183 : vector<4x128xf32>
      %185 = vector.shape_cast %184 : vector<4x128xf32> to vector<1x4x128xf32>
      %cst_80 = arith.constant dense<0.000000e+00> : vector<1xf32>
      %186 = vector.multi_reduction <add>, %185, %cst_80 [1, 2] : vector<1x4x128xf32> to vector<1xf32>
      %187 = vector.shape_cast %186 : vector<1xf32> to vector<1x1x1xf32>
      %188 = vector.extract %187[0, 0, 0] : f32 from vector<1x1x1xf32>
      %cst_81 = arith.constant 0.000000e+00 : f32
      %189 = vector.broadcast %cst_81 : f32 to vector<1x128xf32>
      %190 = arith.cmpf oge, %107, %189 : vector<1x128xf32>
      %191 = arith.andi %190, %110 : vector<1x128xi1>
      %cst_82 = arith.constant 1.000000e+00 : f32
      %cst_83 = arith.constant 0.000000e+00 : f32
      %192 = vector.broadcast %cst_82 : f32 to vector<1x128xf32>
      %193 = vector.broadcast %cst_83 : f32 to vector<1x128xf32>
      %194 = arith.select %191, %192, %193 : vector<1x128xi1>, vector<1x128xf32>
      %195 = vector.shape_cast %194 : vector<1x128xf32> to vector<1x1x128xf32>
      %cst_84 = arith.constant dense<0.000000e+00> : vector<1xf32>
      %196 = vector.multi_reduction <add>, %195, %cst_84 [1, 2] : vector<1x1x128xf32> to vector<1xf32>
      %197 = vector.shape_cast %196 : vector<1xf32> to vector<1x1x1xf32>
      %198 = vector.extract %197[0, 0, 0] : f32 from vector<1x1x1xf32>
      %199 = arith.divf %188, %198 : f32
      %c0_85 = arith.constant 0 : index
      %c0_86 = arith.constant 0 : index
      %200 = vector.load %arg6[%c0_85, %c0_86] : memref<8x128xf32, #tpu.memory_space<vmem>>, vector<8x128xf32>
      %201 = tpu.iota {dimensions = array<i32: 0>} : vector<8x128xi32>
      %202 = arith.sitofp %201 : vector<8x128xi32> to vector<8x128xf32>
      %cst_87 = arith.constant dense<0xFF800000> : vector<128xf32>
      %203 = vector.multi_reduction <maximumf>, %200, %cst_87 [0] : vector<8x128xf32> to vector<128xf32>
      %204 = vector.shape_cast %203 : vector<128xf32> to vector<1x128xf32>
      %205 = vector.broadcast %204 : vector<1x128xf32> to vector<8x128xf32>
      %206 = arith.subf %200, %205 : vector<8x128xf32>
      %207 = math.exp %206 : vector<8x128xf32>
      %cst_88 = arith.constant dense<0.000000e+00> : vector<128xf32>
      %208 = vector.multi_reduction <add>, %207, %cst_88 [0] : vector<8x128xf32> to vector<128xf32>
      %209 = vector.shape_cast %208 : vector<128xf32> to vector<1x128xf32>
      %210 = math.log %209 : vector<1x128xf32>
      %211 = arith.addf %204, %210 : vector<1x128xf32>
      %212 = vector.broadcast %107 : vector<1x128xf32> to vector<8x128xf32>
      %213 = arith.cmpf oeq, %202, %212 : vector<8x128xf32>
      %cst_89 = arith.constant 0.000000e+00 : f32
      %214 = vector.broadcast %cst_89 : f32 to vector<8x128xf32>
      %215 = arith.select %213, %200, %214 : vector<8x128xi1>, vector<8x128xf32>
      %cst_90 = arith.constant dense<0.000000e+00> : vector<128xf32>
      %216 = vector.multi_reduction <add>, %215, %cst_90 [0] : vector<8x128xf32> to vector<128xf32>
      %217 = vector.shape_cast %216 : vector<128xf32> to vector<1x128xf32>
      %cst_91 = arith.constant 1.000000e+00 : f32
      %cst_92 = arith.constant 0.000000e+00 : f32
      %218 = vector.broadcast %cst_91 : f32 to vector<1x128xf32>
      %219 = vector.broadcast %cst_92 : f32 to vector<1x128xf32>
      %220 = arith.select %110, %218, %219 : vector<1x128xi1>, vector<1x128xf32>
      %221 = arith.subf %211, %217 : vector<1x128xf32>
      %222 = arith.mulf %221, %220 : vector<1x128xf32>
      %223 = vector.shape_cast %222 : vector<1x128xf32> to vector<1x1x128xf32>
      %cst_93 = arith.constant dense<0.000000e+00> : vector<1xf32>
      %224 = vector.multi_reduction <add>, %223, %cst_93 [1, 2] : vector<1x1x128xf32> to vector<1xf32>
      %225 = vector.shape_cast %224 : vector<1xf32> to vector<1x1x1xf32>
      %226 = vector.extract %225[0, 0, 0] : f32 from vector<1x1x1xf32>
      %227 = vector.shape_cast %220 : vector<1x128xf32> to vector<1x1x128xf32>
      %cst_94 = arith.constant dense<0.000000e+00> : vector<1xf32>
      %228 = vector.multi_reduction <add>, %227, %cst_94 [1, 2] : vector<1x1x128xf32> to vector<1xf32>
      %229 = vector.shape_cast %228 : vector<1xf32> to vector<1x1x1xf32>
      %230 = vector.extract %229[0, 0, 0] : f32 from vector<1x1x1xf32>
      %231 = arith.divf %226, %230 : f32
      %232 = arith.addf %106, %106 : f32
      %233 = arith.addf %232, %199 : f32
      %234 = arith.addf %233, %231 : f32
      %c0_95 = arith.constant 0 : index
      %235 = memref.load %arg9[%c0_95] : memref<8xf32, #tpu.memory_space<smem>>
      memref.store %106, %arg9[%c0_95] : memref<8xf32, #tpu.memory_space<smem>>
      %c1_96 = arith.constant 1 : index
      %236 = memref.load %arg9[%c1_96] : memref<8xf32, #tpu.memory_space<smem>>
      memref.store %106, %arg9[%c1_96] : memref<8xf32, #tpu.memory_space<smem>>
      %c2_97 = arith.constant 2 : index
      %237 = memref.load %arg9[%c2_97] : memref<8xf32, #tpu.memory_space<smem>>
      memref.store %199, %arg9[%c2_97] : memref<8xf32, #tpu.memory_space<smem>>
      %c3_98 = arith.constant 3 : index
      %238 = memref.load %arg9[%c3_98] : memref<8xf32, #tpu.memory_space<smem>>
      memref.store %231, %arg9[%c3_98] : memref<8xf32, #tpu.memory_space<smem>>
      %c4_99 = arith.constant 4 : index
      %239 = memref.load %arg9[%c4_99] : memref<8xf32, #tpu.memory_space<smem>>
      memref.store %234, %arg9[%c4_99] : memref<8xf32, #tpu.memory_space<smem>>
      %c5 = arith.constant 5 : index
      %240 = memref.load %arg9[%c5] : memref<8xf32, #tpu.memory_space<smem>>
      memref.store %95, %arg9[%c5] : memref<8xf32, #tpu.memory_space<smem>>
      %cst_100 = arith.constant 0.000000e+00 : f32
      %c6 = arith.constant 6 : index
      %241 = memref.load %arg9[%c6] : memref<8xf32, #tpu.memory_space<smem>>
      memref.store %cst_100, %arg9[%c6] : memref<8xf32, #tpu.memory_space<smem>>
      %cst_101 = arith.constant 0.000000e+00 : f32
      %c7 = arith.constant 7 : index
      %242 = memref.load %arg9[%c7] : memref<8xf32, #tpu.memory_space<smem>>
      memref.store %cst_101, %arg9[%c7] : memref<8xf32, #tpu.memory_space<smem>>
    } else {
    }
    return
  }
  func.func @transform_0(%arg0: i32) -> (i32, i32) {
    %c0_i32 = arith.constant 0 : i32
    %c0_i32_0 = arith.constant 0 : i32
    return %c0_i32, %arg0 : i32, i32
  }
  func.func @transform_1(%arg0: i32) -> (i32, i32) {
    %c0_i32 = arith.constant 0 : i32
    %c0_i32_0 = arith.constant 0 : i32
    return %c0_i32, %arg0 : i32, i32
  }
  func.func @transform_2(%arg0: i32) -> (i32, i32) {
    %c0_i32 = arith.constant 0 : i32
    %c0_i32_0 = arith.constant 0 : i32
    return %c0_i32, %arg0 : i32, i32
  }
  func.func @transform_3(%arg0: i32) -> (i32, i32) {
    %c0_i32 = arith.constant 0 : i32
    %c0_i32_0 = arith.constant 0 : i32
    return %c0_i32, %arg0 : i32, i32
  }
  func.func @transform_4(%arg0: i32) -> (i32, i32) {
    %c0_i32 = arith.constant 0 : i32
    %c0_i32_0 = arith.constant 0 : i32
    %c0_i32_1 = arith.constant 0 : i32
    return %c0_i32, %c0_i32_0 : i32, i32
  }
  func.func @transform_5(%arg0: i32) -> (i32, i32) {
    %c0_i32 = arith.constant 0 : i32
    %c0_i32_0 = arith.constant 0 : i32
    %c0_i32_1 = arith.constant 0 : i32
    return %c0_i32, %c0_i32_0 : i32, i32
  }
  func.func @transform_6(%arg0: i32) -> (i32, i32) {
    %c0_i32 = arith.constant 0 : i32
    %c0_i32_0 = arith.constant 0 : i32
    %c0_i32_1 = arith.constant 0 : i32
    return %c0_i32, %c0_i32_0 : i32, i32
  }
  func.func @transform_7(%arg0: i32) -> (i32, i32) {
    %c0_i32 = arith.constant 0 : i32
    %c0_i32_0 = arith.constant 0 : i32
    %c0_i32_1 = arith.constant 0 : i32
    return %c0_i32, %c0_i32_0 : i32, i32
  }
  func.func @transform_8(%arg0: i32) -> i32 {
    %c0_i32 = arith.constant 0 : i32
    %c0_i32_0 = arith.constant 0 : i32
    return %c0_i32 : i32
  }
}

</mosaic_0001>

<bundles_post_ra>
// kernel: tpu_custom_call.1
= control target key start
LH: loop header
LB: loop body
LE: loop exit
PB: predicated region body
PF: predicated region fallthrough
CT: control target
= control target key end

     0   :  { %s1583_s0 = inlined_call_operand.hbm [shape: f32[4,384], index: 0, kind: input, shape index: {}]   ;;  %s1584_s1 = inlined_call_operand.hbm [shape: f32[4,384], index: 1, kind: input, shape index: {}]   ;;  %s1585_s2 = inlined_call_operand.vmem [shape: f32[2,384], index: 2, kind: input, shape index: {}]   ;;  %s1586_s3 = inlined_call_operand.hbm [shape: f32[1,384], index: 3, kind: input, shape index: {}]   ;;  %s1587_s4 = inlined_call_operand.hbm [shape: f32[32,128], index: 4, kind: input, shape index: {}]   ;;  %s1588_s5 = inlined_call_operand.vmem [shape: f32[8,128], index: 5, kind: input, shape index: {}]   ;;  %s1589_s6 = inlined_call_operand.vmem [shape: f32[4,128], index: 6, kind: input, shape index: {}]   ;;  %s1590_s7 = inlined_call_operand.vmem [shape: f32[1,128], index: 7, kind: input, shape index: {}]   ;;  %s1591_s8 = inlined_call_operand.hbm [shape: f32[8], index: 8, kind: output, shape index: {}]  }
   0x1   :  { %1603 = sst [smem:[#allocation19_spill]] %s1584_s1 }
   0x2   :  { %1604 = sst [smem:[#allocation20_spill]] %s1591_s8 }
   0x3   :  { %13 = vsyncpa [#allocation4], 0 }
   0x4   :  { %15 = vsyncpa [#allocation4 + $0x1], 0 }
   0x5   :  { %16 = vsyncpa [#allocation7], 0 }
   0x6   :  { %18 = vsyncpa [#allocation7 + $0x1], 0 }
   0x7   :  { %19 = vsyncpa [#allocation10], 0 }
   0x8   :  { %20 = vsyncpa [#allocation5], 0  ;;  %s1265_s27 = smov 0   ;;  %s1267_s28 = smov 0  }
   0x9   :  { %s1269_s29 = smov 0   ;;  %s1271_s30 = smov 0  }
   0xa LB: > { %1605 = sst [smem:[#allocation16_spill]] %s1202_s29  ;;  %s1286_s9 = sadd.s32 1, %s1206_s30   ;;  %s1206_s30 = sphi %s1271_s30, %s1625_s30   ;;  %s1202_s29 = sphi %s1269_s29, %s1627_s29   ;;  %s1198_s28 = sphi %s1267_s28, %s1629_s28   ;;  %s1194_s27 = sphi %s1265_s27, %s1628_s27  }
   0xb   : > { %1606 = sst [smem:[#allocation17_spill]] %s1286_s9  ;;  %s33_s10 = sadd.s32 1, %s1202_s29 }
   0xc   : > { %s30_s11 = ssub.s32 %s1206_s30, %s1286_s9  ;;  %p40_p0 = scmp.ne.s32.totalorder %s1202_s29, %s1198_s28 }
   0xd   : > { %p31_p1 = scmp.eq.s32.totalorder %s30_s11, 0  ;;  %p41_p2 = scmp.eq.s32.totalorder %s1206_s30, 0 }
   0xe   : > { %p969_p3 = scmp.lt.s32.totalorder %s1206_s30, 3  ;;  %s1299_s13 = sand.u32 1, %s1202_s29  }
   0xf   : > { %s1296_s12 = scalar_select %p31_p1, %s1202_s29, %s33_s10  }
  0x10   : > { %p42_p4 = por %p41_p2, %p40_p0  ;;  %s895_s14 = sshll.u32 %s1299_s13, 2 }
  0x11   : > { %1607 = sst [smem:[#allocation18_spill]] %s1296_s12  ;;  %s896_s15 = sshll.u32 %s1206_s30, 6 }
  0x12   : > { %p1303_p5 = pnand %p969_p3, %p42_p4  ;;  %s293_s17 = sand.u32 1, %s1206_s30  }
  0x13   : > { %s1609_s1 = sld [smem:[#allocation19_spill]]  ;;  %s297_s21 = scalar_lea.vmem [#allocation6], %s895_s14 }
  0x14   : > { %s1608_s16 = scalar_select %p1303_p5, 1, 0 }
  0x15   : > { %s304_s22 = sshll.u32 %s297_s21, 4  ;;  %s1319_s23 = scalar_lea.sflag [#allocation7], %s293_s17  ;;  %s1317_s22 = int_to_ptr.vmem [resolvable:$true] %s304_s22 }
  0x16   : > { %p1325_p7 = pneg %p1303_p5 }
  0x18   : > { %s1610_s25 = scalar_select %p1325_p7, 1, 0 }
  0x19   : > { %s1313_s20 = scalar_lea.hbm %s1609_s1, %s896_s15  ;;  %s1035_s11 = scalar_lea.hbm %s1609_s1, 192 }
  0x1a   : > { %s1030_s24 = scalar_lea.hbm %s1313_s20, 64  ;;  %p1036_p10 = scmp.lt.u32.totalorder %s1313_s20, %s1609_s1 }
  0x1b   : > { %p1031_p6 = scmp.ne.s32.totalorder %s1313_s20, %s1030_s24  ;;  %p1037_p11 = scmp.lt.u32.totalorder %s1035_s11, %s1030_s24 }
  0x1c   : > { %p1039_p13 = scmp.lt.u32.totalorder %s1030_s24, %s1313_s20 }
  0x1d   : > { %p1033_p8 = pnand %p1325_p7, %p1031_p6  ;;  %p1038_p12 = por %p1037_p11, %p1036_p10 }
  0x1f   : > { %p1034_p9 = pneg %p1033_p8  ;;  %p1040_p0 = por %p1039_p13, %p1038_p12 }
  0x21   : > { %p1041_p1 = pnand %p1040_p0, %p1034_p9 }
  0x23   : > { %1044 = shalt.err (!%p1041_p1)
}
  0x24   : > { %s1045_s17 = scalar_lea.vmem %s1317_s22, 64  ;;  %s1208_s21 = smov [#allocation6]  }
  0x25   : > { %p1046_p2 = scmp.ne.s32.totalorder %s1317_s22, %s1045_s17  ;;  %s1050_s26 = sshll.u32 %s1208_s21, 4  ;;  %s1051_s26 = int_to_ptr.vmem [resolvable:$false] %s1050_s26 }
  0x26   : > { %s1052_s10 = scalar_lea.vmem %s1051_s26, 128  ;;  %p1053_p6 = scmp.lt.s32.totalorder %s1317_s22, %s1051_s26 }
  0x27   : > { %p1048_p3 = pnand %p1046_p2, %p1325_p7  ;;  %p1054_p8 = scmp.lt.s32.totalorder %s1052_s10, %s1045_s17 }
  0x29   : > { %p1049_p4 = pneg %p1048_p3  ;;  %p1055_p10 = por %p1054_p8, %p1053_p6 }
  0x2b   : > { %p1056_p11 = pnand %p1055_p10, %p1049_p4 }
  0x2d   : > { %1059 = shalt.err (!%p1056_p11)
}
  0x2e   : > { %964 = dma.hbm_to_vmem [thread:$0]  (!%p1303_p5), %s1313_s20, 64, %s1317_s22, %s1319_s23  }
  0x2f   : > { %s1350_s24 = sadd.s32 4294967295, %s1206_s30   ;;  %p46_p9 = scmp.ne.s32.totalorder %s1198_s28, %s1194_s27 }
  0x30   : > { %p1595_p12 = scmp.eq.s32.totalorder %s1350_s24, 0  ;;  %p892_p13 = scmp.ge.s32.totalorder %s1206_s30, 1 }
  0x31   : > { %p240_p0 = scmp.lt.s32.totalorder %s1206_s30, 4  ;;  %s1209_s20 = smov [#allocation9]  }
  0x32   : > { %p1360_p2 = por %p1595_p12, %p46_p9  ;;  %s252_s22 = sshll.u32 %s1209_s20, 4  ;;  %s1368_s22 = int_to_ptr.vmem [resolvable:$true] %s252_s22 }
  0x33   : > { %p1364_p3 = pnand %p892_p13, %p240_p0  ;;  %s1383_s21 = scalar_lea.hbm %s1583_s0, %s896_s15 }
  0x34   : > { %s1611_s11 = scalar_select %p1360_p2, 1, 0 }
  0x35   : > { %s1612_s18 = scalar_select %p1364_p3, 1, 0 }
  0x36   : > { %p954_p4 = pneg %p1364_p3  ;;  %s279_s26 = scalar_lea.vmem [#allocation3], %s895_s14 }
  0x37   : > { %s286_s10 = sshll.u32 %s279_s26, 4  ;;  %s1060_s12 = scalar_lea.hbm %s1587_s4, 512  ;;  %s1387_s10 = int_to_ptr.vmem [resolvable:$true] %s286_s10 }
  0x38   : > { %p1374_p6 = pnand %p954_p4, %p1595_p12  ;;  %p1061_p8 = scmp.ne.s32.totalorder %s1587_s4, %s1060_s12 }
  0x39   : > { %p1067_p13 = scmp.lt.u32.totalorder %s1060_s12, %s1587_s4 }
  0x3a   : > { %p1062_p10 = pneg %p1374_p6 }
  0x3c   : > { %p1063_p11 = pnand %p1062_p10, %p1061_p8 }
  0x3e   : > { %p1064_p9 = pneg %p1063_p11 }
  0x40   : > { %p1069_p0 = pnand %p1067_p13, %p1064_p9 }
  0x42   : > { %1072 = shalt.err (!%p1069_p0)
}
  0x43   : > { %s1073_s14 = scalar_lea.vmem %s1368_s22, 512  ;;  %p1081_p2 = scmp.lt.s32.totalorder %s1368_s22, %s1368_s22 }
  0x44   : > { %p1074_p4 = scmp.ne.s32.totalorder %s1368_s22, %s1073_s14  ;;  %p1082_p3 = scmp.lt.s32.totalorder %s1073_s14, %s1073_s14 }
  0x46   : > { %p1076_p1 = pnand %p1074_p4, %p1062_p10  ;;  %p1083_p5 = por %p1082_p3, %p1081_p2 }
  0x48   : > { %p1077_p12 = pneg %p1076_p1 }
  0x4a   : > { %p1084_p7 = pnand %p1083_p5, %p1077_p12 }
  0x4c   : > { %1087 = shalt.err (!%p1084_p7)
}
  0x4d   : > { %s1210_s1 = smov 128   ;;  %s1211_s29 = smov 8  }
  0x4e   : > { %957 = dma.hbm_to_vmem [thread:$0]  (!%p1374_p6), %s1587_s4, 512, %s1368_s22, [#allocation10], %s1210_s1, %s1210_s1, %s1211_s29  }
  0x4f   : > { %s276_s17 = scalar_lea.sflag [#allocation4], %s1299_s13  ;;  %s1088_s26 = scalar_lea.hbm %s1383_s21, 64 }
  0x50   : > { %p1089_p1 = scmp.ne.s32.totalorder %s1383_s21, %s1088_s26  ;;  %p1614_p5 = scmp.ne.s32.totalorder %s1610_s25, 0 }
  0x51   : > { %s1093_s15 = scalar_lea.hbm %s1583_s0, 192  ;;  %p1094_p2 = scmp.lt.u32.totalorder %s1383_s21, %s1583_s0 }
  0x52   : > { %p1091_p7 = pnand %p1089_p1, %p1614_p5  ;;  %p1095_p3 = scmp.lt.u32.totalorder %s1093_s15, %s1088_s26 }
  0x53   : > { %p1097_p10 = scmp.lt.u32.totalorder %s1088_s26, %s1383_s21 }
  0x54   : > { %p1092_p12 = pneg %p1091_p7  ;;  %p1096_p8 = por %p1095_p3, %p1094_p2 }
  0x56   : > { %p1098_p11 = por %p1097_p10, %p1096_p8 }
  0x58   : > { %p1099_p9 = pnand %p1098_p11, %p1092_p12 }
  0x5a   : > { %1102 = shalt.err (!%p1099_p9)
}
  0x5b   : > { %s1103_s22 = scalar_lea.vmem %s1387_s10, 64  ;;  %s1212_s27 = smov [#allocation3]  }
  0x5c   : > { %p1104_p6 = scmp.ne.s32.totalorder %s1387_s10, %s1103_s22  ;;  %s1108_s1 = sshll.u32 %s1212_s27, 4  ;;  %s1109_s1 = int_to_ptr.vmem [resolvable:$false] %s1108_s1 }
  0x5d   : > { %s1110_s8 = scalar_lea.vmem %s1109_s1, 128  ;;  %p1111_p4 = scmp.lt.s32.totalorder %s1387_s10, %s1109_s1 }
  0x5e   : > { %p1106_p13 = pnand %p1104_p6, %p1614_p5  ;;  %p1112_p1 = scmp.lt.s32.totalorder %s1110_s8, %s1103_s22 }
  0x60   : > { %p1107_p0 = pneg %p1106_p13  ;;  %p1113_p7 = por %p1112_p1, %p1111_p4 }
  0x62   : > { %p1114_p2 = pnand %p1113_p7, %p1107_p0 }
  0x64   : > { %1117 = shalt.err (!%p1114_p2)
}
  0x65   : > { %p1615_p12 = scmp.ne.s32.totalorder %s1608_s16, 0  ;;  %s899_s29 = sshll.u32 %s1206_s30, 4 }
  0x66   : > { %s321_s9 = scalar_lea.vmem [#allocation8], %s1299_s13  ;;  %s326_s19 = scalar_lea.hbm %s1586_s3, %s899_s29 }
  0x67   : > { %961 = dma.hbm_to_vmem [thread:$0]  (!%p1615_p12), %s1383_s21, 64, %s1387_s10, %s276_s17  }
  0x68   : > { %s328_s12 = sshll.u32 %s321_s9, 4  ;;  %s1118_s15 = scalar_lea.hbm %s326_s19, 16  ;;  %s329_s12 = int_to_ptr.vmem [resolvable:$true] %s328_s12 }
  0x69   : > { %p1119_p3 = scmp.ne.s32.totalorder %s326_s19, %s1118_s15  ;;  %s1123_s27 = scalar_lea.hbm %s1586_s3, 48 }
  0x6a   : > { %p1124_p11 = scmp.lt.u32.totalorder %s326_s19, %s1586_s3  ;;  %p1125_p9 = scmp.lt.u32.totalorder %s1123_s27, %s1118_s15 }
  0x6b   : > { %p1121_p8 = pnand %p1119_p3, %p1614_p5  ;;  %p1127_p13 = scmp.lt.u32.totalorder %s1118_s15, %s326_s19 }
  0x6c   : > { %p1126_p6 = por %p1125_p9, %p1124_p11 }
  0x6d   : > { %p1122_p10 = pneg %p1121_p8 }
  0x6e   : > { %p1128_p0 = por %p1127_p13, %p1126_p6 }
  0x70   : > { %p1129_p4 = pnand %p1128_p0, %p1122_p10 }
  0x72   : > { %1132 = shalt.err (!%p1129_p4)
}
  0x73   : > { %s1133_s30 = scalar_lea.vmem %s329_s12, 16  ;;  %s1213_s13 = smov [#allocation8]  }
  0x74   : > { %p1134_p1 = scmp.ne.s32.totalorder %s329_s12, %s1133_s30  ;;  %s1138_s21 = sshll.u32 %s1213_s13, 4  ;;  %s1139_s21 = int_to_ptr.vmem [resolvable:$false] %s1138_s21 }
  0x75   : > { %s1140_s10 = scalar_lea.vmem %s1139_s21, 32  ;;  %p1141_p3 = scmp.lt.s32.totalorder %s329_s12, %s1139_s21 }
  0x76   : > { %p1136_p7 = pnand %p1134_p1, %p1614_p5  ;;  %p1142_p8 = scmp.lt.s32.totalorder %s1140_s10, %s1133_s30 }
  0x78   : > { %p1137_p2 = pneg %p1136_p7  ;;  %p1143_p12 = por %p1142_p8, %p1141_p3 }
  0x7a   : > { %p1144_p9 = pnand %p1143_p12, %p1137_p2 }
  0x7c   : > { %1147 = shalt.err (!%p1144_p9)
}
  0x7d   : > { %p1616_p11 = scmp.ne.s32.totalorder %s1608_s16, 0  ;;  %p1617_p10 = scmp.ne.s32.totalorder %s1612_s18, 0 }
  0x7e   : > { %s339_s25 = sand.u32 (!%p1617_p10), 1, %s1198_s28   ;;  %p1618_p5 = scmp.ne.s32.totalorder (!%p1617_p10), %s1611_s11, 0 }
  0x7f   : > { %967 = dma.hbm_to_vmem [thread:$0]  (!%p1616_p11), %s326_s19, 16, %s329_s12, %s1319_s23  }
  0x80   : > { %337 = sbr.rel (%p1617_p10) target bundleno = 689 (0x2b1), region = 52  ;;  %s901_s17 = sshll.u32 (!%p1617_p10), %s339_s25, 2 }
  0x81   : > { %s340_s29 = scalar_lea.sflag (!%p1617_p10), [#allocation4], %s339_s25  ;;  %s343_s9 = scalar_lea.vmem (!%p1617_p10), [#allocation3], %s901_s17 }
  0x87   : > { %1177 = dma.done.wait (%p1618_p5), %s340_s29, 64  }
  0x88   : > { %1179 = vsyncadd (%p1618_p5), %s340_s29, 4294967232  ;;  %s348_s26 = sand.u32 1, %s1350_s24   ;;  %s352_s20 = scalar_lea.vmem [#allocation6], %s901_s17 }
  0x89   : > { %s349_s16 = scalar_lea.sflag [#allocation7], %s348_s26 }
  0x8a   : > { %1181 = dma.done.wait (%p1618_p5), %s349_s16, 80  }
  0x8b   : > { %1183 = vsyncadd (%p1618_p5), %s349_s16, 4294967216  ;;  %s360_s23 = scalar_lea.vmem [#allocation8], %s339_s25  ;;  %p1619_p12 = scmp.eq.s32.totalorder %s1350_s24, 0 }
  0x8d   : > { %1185 = dma.done.wait (%p1619_p12), [#allocation10], 512   ;;  %p1620_p6 = pmov %p1619_p12 }
  0x8e   : > { %p405_p13 = scmp.lt.s32.totalorder %s1350_s24, 2  ;;  %p1621_p0 = scmp.ne.s32.totalorder %s1350_s24, 0 }
  0x8f   : > { %1187 = vsyncadd (%p1620_p6), [#allocation10], 4294966784  ;;  %v1214_v0 = vmov (!%p1621_p0), 0.0  }
  0x90   : > { %s406_s18 = scalar_select %p405_p13, %s1350_s24, 2 }
  0x91   : > { %412 = sbr.rel (%p1621_p0) target bundleno = 152 (0x98), region = 72  ;;  %413 = vst [vmem:[#allocation2] sm:$0xff] (!%p1621_p0), %v1214_v0 }
  0x92   : > { %s904_s12 = sshll.u32 %s406_s18, 1 }
  0x93   : > { %s408_s14 = scalar_lea.vmem %s1585_s2, %s904_s12 }
  0x98 PF: > { %v414_v1 = vlaneseq  ;;  %s906_s11 = sshll.u32 %s1350_s24, 7  ;;  %v420_v3 = vld [vmem:[%s360_s23] sm:$0x1]  ;;  %vm452_vm0 = vcmask 1041408   ;;  %v421_v8 = vld [vmem:[%s343_s9] sm:$0xf] }
  0x99   : > { %v417_v2 = vstv %s906_s11  ;;  %v423_v6 = vld [vmem:[%s408_s14] sm:$0x3]  ;;  %v422_v9 = vld [vmem:[%s352_s20] sm:$0xf]  ;;  %vm424_vm1 = vcmp.gt.f32.partialorder %v420_v3, 0.0  ;;  %vm446_vm2 = vcmp.ge.f32.partialorder %v420_v3, 0.0 }
  0x9a   : > { %v1474_v4 = vand.u32 127, %v414_v1  ;;  %v1476_v5 = vshrl.u32 %v414_v1, 7  ;;  %v453_v10 = vsel %vm452_vm0, %v423_v6, -inf  ;;  %vm488_vm4 = vcmp.ne.f32.partialorder %v420_v3, -1.0  ;;  %v504_v14 = vld [vmem:[#allocation2 + $0x1] sm:$0x1] }
  0x9b   : > { %v454_v12 = vrot.slane %v453_v10, 4  ;;  %v427_v13 = vsub.f32 %v421_v8, %v422_v9  ;;  %v1215_v16 = vmov 0.0   ;;  %v510_v18 = vld [vmem:[#allocation2 + $0x3] sm:$0x1]  ;;  %vm494_vm9 = vcmask 1043456   ;;  %p909_p4 = scmp.ne.s32.totalorder %s1350_s24, 2 }
  0x9c   : > { %v418_v7 = vadd.s32 %v417_v2, %v1474_v4  ;;  %v1481_v11 = vsub.s32 0, %v1476_v5  ;;  %v451_v40 = vcvt.s32.f32 %v1476_v5  ;;  %v493_v53 = vld [vmem:[#allocation2] sm:$0x1]  ;;  %v507_v9 = vld [vmem:[#allocation2 + $0x2] sm:$0x1]  ;;  %vm518_vm11 = vcmask (!%p909_p4), 1040384  }
  0x9d   : > { %v455_v15 = vmax.f32 %v453_v10, %v454_v12  ;;  %vm571_vm12 = vcmp.lt.s32.totalorder (!%p909_p4), %v1474_v4, 32  ;;  %s1218_s18 = smov (!%p909_p4), 0.0  }
  0x9e   : > { %vm419_vm3 = vcmp.lt.s32.totalorder %v418_v7, 300  ;;  %v477_v41 = vrot.slane %v420_v3, %v1481_v11  ;;  %770 = sst [smem:[#allocation11 + $0x6]] (!%p909_p4), %s1218_s18 }
  0x9f   : > { %vm425_vm5 = vmand %vm424_vm1, %vm419_vm3  ;;  %v456_v21 = vrot.slane %v455_v15, 2  ;;  %772 = sst [smem:[#allocation11 + $0x7]] (!%p909_p4), %s1218_s18 }
  0xa0   : > { %v426_v17 = vsel %vm425_vm5, 1.0, %v1215_v16  ;;  %vm447_vm6 = vmand %vm446_vm2, %vm419_vm3  ;;  %vm479_vm10 = vcmp.eq.f32.partialorder %v451_v40, %v477_v41  ;;  %v599_v41 = vld [vmem:[#allocation9 + $0xc] sm:$0xf] (!%p909_p4) }
  0xa1   : > { %v432_v19 = vrot.slane %v426_v17, %v1481_v11  ;;  %v448_v20 = vsel %vm447_vm6, 1.0, %v1215_v16  ;;  %vm489_vm7 = vmand %vm488_vm4, %vm419_vm3  ;;  %v457_v25 = vmax.f32 %v455_v15, %v456_v21  ;;  %v480_v46 = vsel %vm479_vm10, %v423_v6, 0.0 }
  0xa2   : > { %v505_v22 = vadd.f32 %v504_v14, %v448_v20  ;;  %v490_v23 = vsel %vm489_vm7, 1.0, %v1215_v16  ;;  %v481_v51 = vsel %vm452_vm0, %v480_v46, 0.0  ;;  %v1499_v20 = vld [vmem:[%s1590_s7] sm:$0x1] (!%p909_p4) }
  0xa3   : > { %v434_v24 = vmul.f32 %v432_v19, %v427_v13  ;;  %v511_v26 = vadd.f32 %v510_v18, %v490_v23  ;;  %v458_v28 = vrot.slane %v457_v25, 1  ;;  %v482_v56 = vrot.slane %v481_v51, 4 }
  0xa4   : > { %506 = vst [vmem:[#allocation2 + $0x1] sm:$0x1] %v505_v22  ;;  %vm644_vm13 = vcmp.gt.f32.partialorder (!%p909_p4), %v1499_v20, 0.0  ;;  %vm677_vm14 = vcmp.ge.f32.partialorder (!%p909_p4), %v1499_v20, 0.0  ;;  %vm573_vm15 = vcmp.eq.f32.partialorder (!%p909_p4), %v1499_v20, 0.0  ;;  %v1216_v22 = vmov (!%p909_p4), 0  }
  0xa5   : > { %v435_v27 = vand.u32 2147483647, %v434_v24  ;;  %512 = vst [vmem:[#allocation2 + $0x3] sm:$0x1] %v511_v26  ;;  %v459_v30 = vmax.f32 %v457_v25, %v458_v28  ;;  %v483_v60 = vadd.f32 %v482_v56, %v481_v51  ;;  %vm645_vm1 = vmand (!%p909_p4), %vm644_vm13, %vm571_vm12  ;;  %v572_v25 = vld [vmem:[#allocation9] sm:$0xf] (!%p909_p4) }
  0xa6   : > { %vm678_vm2 = vmand (!%p909_p4), %vm677_vm14, %vm571_vm12  ;;  %vm591_vm3 = vcmp.eq.f32.partialorder (!%p909_p4), %v1499_v20, 2.0  ;;  %v1217_v28 = vmov (!%p909_p4), 0.0   ;;  %vm600_vm4 = vcmp.eq.f32.partialorder (!%p909_p4), %v1499_v20, 3.0  ;;  %vm609_vm7 = vcmp.eq.f32.partialorder (!%p909_p4), %v1499_v20, 4.0 }
  0xa7   : > { %vm436_vm8 = vcmp.lt.f32.partialorder %v435_v27, 0.11111111  ;;  %v908_v29 = vadd.f32 -0.055555556, %v435_v27  ;;  %v460_v34 = vsub.f32 %v423_v6, %v459_v30  ;;  %v484_v63 = vrot.slane %v483_v60, 2 }
  0xa8   : > { %v907_v31 = vsel %vm436_vm8, 1.0, %v1215_v16  ;;  %vm618_vm8 = vcmp.eq.f32.partialorder (!%p909_p4), %v1499_v20, 5.0  ;;  %vm627_vm13 = vcmp.eq.f32.partialorder (!%p909_p4), %v1499_v20, 6.0 }
  0xa9   : > { %v439_v32 = vmul.f32 4.5, %v907_v31  ;;  %v442_v33 = vsub.f32 1.0, %v907_v31  ;;  %v461_v37 = vmul.f32 1.442695, %v460_v34  ;;  %v485_v0 = vadd.f32 %v484_v63, %v483_v60  ;;  %v581_v31 = vld [vmem:[#allocation9 + $0x4] sm:$0xf] (!%p909_p4) }
  0xaa   : > { %v590_v34 = vld [vmem:[#allocation9 + $0x8] sm:$0xf] (!%p909_p4)  ;;  %v628_v51 = vsel (!%p909_p4), %vm627_vm13, 1, %v1216_v22 }
  0xab   : > { %v440_v35 = vmul.f32 %v439_v32, %v434_v24  ;;  %v444_v36 = vmul.f32 %v908_v29, %v442_v33  ;;  %1014 = vpow2.f32 %v461_v37  ;;  %v486_v1 = vrot.slane %v485_v0, 1  ;;  %v529_v14 = vld [vmem:[#allocation2 + $0x1] sm:$0x1] (!%p909_p4) }
  0xac   : > { %v555_v17 = vld [vmem:[#allocation2 + $0x3] sm:$0x1] (!%p909_p4)  ;;  %v530_v18 = vsel (!%p909_p4), %vm518_vm11, %v529_v14, 0.0  ;;  %v646_v29 = vsel (!%p909_p4), %vm645_vm1, 1.0, %v1217_v28  ;;  %v592_v32 = vsel (!%p909_p4), %vm591_vm3, 1, %v1216_v22  ;;  %v601_v37 = vsel (!%p909_p4), %vm600_vm4, 1, %v1216_v22 }
  0xad   : > { %v441_v38 = vmul.f32 %v440_v35, %v434_v24  ;;  %v487_v6 = vadd.f32 %v486_v1, %v485_v0  ;;  %v556_v21 = vsel (!%p909_p4), %vm518_vm11, %v555_v17, 0.0  ;;  %v596_v35 = vrot.slane (!%p909_p4), %v592_v32, %v1481_v11 }
  0xaf   : > { %v445_v39 = vadd.f32 %v444_v36, %v441_v38  ;;  %vm1520_vm10 = vcmp.eq.s32.totalorder (!%p909_p4), %v596_v35, 1 }
  0xb1   : > { %v495_v42 = vsel %vm494_vm9, %v445_v39, 0.0 }
  0xb2   : > { %v496_v43 = vrot.slane %v495_v42, 4 }
  0xb4   : > { %v497_v44 = vadd.f32 %v496_v43, %v495_v42  ;;  %v605_v42 = vrot.slane (!%p909_p4), %v601_v37, %v1481_v11  ;;  %v610_v43 = vsel (!%p909_p4), %vm609_vm7, 1, %v1216_v22 }
  0xb5   : > { %v1015_v47 = vpop.eup %1014  ;;  %v614_v46 = vrot.slane (!%p909_p4), %v610_v43, %v1481_v11 }
  0xb6   : > { %v498_v45 = vrot.slane %v497_v44, 2  ;;  %v463_v49 = vsel %vm452_vm0, %v1015_v47, 0.0  ;;  %vm582_vm0 = vcmp.eq.f32.partialorder (!%p909_p4), %v1499_v20, 1.0  ;;  %v619_v47 = vsel (!%p909_p4), %vm618_vm8, 1, %v1216_v22 }
  0xb7   : > { %v464_v50 = vrot.slane %v463_v49, 4  ;;  %v583_v24 = vsel (!%p909_p4), %vm582_vm0, 1, %v1216_v22  ;;  %vm606_vm14 = vcmp.eq.s32.totalorder (!%p909_p4), %v605_v42, 1  ;;  %vm615_vm0 = vcmp.eq.s32.totalorder (!%p909_p4), %v614_v46, 1 }
  0xb8   : > { %v499_v48 = vadd.f32 %v498_v45, %v497_v44  ;;  %v587_v27 = vrot.slane (!%p909_p4), %v583_v24, %v1481_v11  ;;  %v608_v45 = vld [vmem:[#allocation9 + $0x10] sm:$0xf] (!%p909_p4) }
  0xb9   : > { %v465_v54 = vadd.f32 %v464_v50, %v463_v49  ;;  %v617_v49 = vld [vmem:[#allocation9 + $0x14] sm:$0xf] (!%p909_p4)  ;;  %v623_v50 = vrot.slane (!%p909_p4), %v619_v47, %v1481_v11 }
  0xba   : > { %v500_v52 = vrot.slane %v499_v48, 1  ;;  %vm588_vm6 = vcmp.eq.s32.totalorder (!%p909_p4), %v587_v27, 1 }
  0xbb   : > { %v466_v57 = vrot.slane %v465_v54, 2  ;;  %vm624_vm1 = vcmp.eq.s32.totalorder (!%p909_p4), %v623_v50, 1 }
  0xbc   : > { %v501_v55 = vadd.f32 %v500_v52, %v499_v48  ;;  %v694_v48 = vld [vmem:[%s1588_s5] sm:$0xff] (!%p909_p4) }
  0xbd   : > { %v467_v59 = vadd.f32 %v466_v57, %v465_v54  ;;  %v632_v54 = vrot.slane (!%p909_p4), %v628_v51, %v1481_v11  ;;  %v635_v57 = vld [vmem:[#allocation9 + $0x1c] sm:$0xf] (!%p909_p4) }
  0xbe   : > { %v502_v58 = vadd.f32 %v501_v55, %v493_v53  ;;  %v626_v53 = vld [vmem:[#allocation9 + $0x18] sm:$0xf] (!%p909_p4) }
  0xbf   : > { %v468_v61 = vrot.slane %v467_v59, 1 }
  0xc0   : > { %503 = vst [vmem:[#allocation2] sm:$0x1] %v502_v58 }
  0xc1   : > { %v469_v62 = vadd.f32 %v468_v61, %v467_v59  ;;  %v695_v59 = vrot.slane (!%p909_p4), %v694_v48, 4  ;;  %v647_v61 = vld [vmem:[%s1589_s6] sm:$0xf] (!%p909_p4) }
  0xc3   : > { %1016 = vlog2.f32 %v469_v62  ;;  %v653_v62 = vrot.slane (!%p909_p4), %v646_v29, %v1481_v11  ;;  %v696_v0 = vmax.f32 (!%p909_p4), %v694_v48, %v695_v59 }
  0xc7   : > { %v517_v13 = vld [vmem:[#allocation2] sm:$0x1] (!%p909_p4) }
  0xc8   : > { %v519_v15 = vsel (!%p909_p4), %vm518_vm11, %v517_v13, 0.0 }
  0xc9   : > { %520 = vadd.xlane.f32.xlu0 (!%p909_p4), %v519_v15 }
  0xcd   : > { %v1017_v2 = vpop.eup %1016  ;;  %531 = vadd.xlane.f32.xlu0 (!%p909_p4), %v530_v18 }
  0xce   : > { %v471_v3 = vmul.f32 0.6931472, %v1017_v2 }
  0xd0   : > { %v472_v7 = vadd.f32 %v471_v3, %v459_v30  ;;  %v679_v30 = vsel (!%p909_p4), %vm678_vm2, 1.0, %v1217_v28  ;;  %vm633_vm2 = vcmp.eq.s32.totalorder (!%p909_p4), %v632_v54, 1  ;;  %v697_v3 = vrot.slane (!%p909_p4), %v696_v0, 2 }
  0xd1   : > { %v680_v33 = vsel (!%p909_p4), %vm518_vm11, %v679_v30, 0.0 }
  0xd2   : > { %v491_v8 = vsub.f32 %v472_v7, %v487_v6  ;;  %516 = sbr.rel (%p909_p4) target bundleno = 668 (0x29c), region = 76  ;;  %v698_v7 = vmax.f32 (!%p909_p4), %v696_v0, %v697_v3 }
  0xd4   : > { %v492_v10 = vmul.f32 %v491_v8, %v490_v23  ;;  %v574_v23 = vsel (!%p909_p4), %vm573_vm15, 1, %v1216_v22  ;;  %vm636_vm15 = vcmp.eq.f32.partialorder (!%p909_p4), %v1499_v20, 7.0 }
  0xd5   : > { %v578_v26 = vrot.slane (!%p909_p4), %v574_v23, %v1481_v11  ;;  %v637_v55 = vsel (!%p909_p4), %vm636_vm15, 1, %v1216_v22  ;;  %v727_v23 = vsel (!%p909_p4), %vm571_vm12, 1.0, %v1217_v28 }
  0xd6   : > { %v508_v12 = vadd.f32 %v507_v9, %v492_v10  ;;  %v641_v58 = vrot.slane (!%p909_p4), %v637_v55, %v1481_v11  ;;  %v699_v9 = vrot.slane (!%p909_p4), %v698_v7, 1 }
  0xd7   : > { %vm579_vm5 = vcmp.eq.s32.totalorder (!%p909_p4), %v578_v26, 1  ;;  %v717_v26 = vrot.slane (!%p909_p4), %v1499_v20, %v1481_v11 }
  0xd8   : > { %509 = vst [vmem:[#allocation2 + $0x2] sm:$0x1] %v508_v12  ;;  %v580_v36 = vsel (!%p909_p4), %vm579_vm5, %v572_v25, 0.0  ;;  %vm642_vm3 = vcmp.eq.s32.totalorder (!%p909_p4), %v641_v58, 1  ;;  %v700_v12 = vmax.f32 (!%p909_p4), %v698_v7, %v699_v9  ;;  %v740_v25 = vsel (!%p909_p4), %vm518_vm11, %v727_v23, 0.0 }
  0xd9   : > { %v589_v38 = vsel %vm588_vm6, %v581_v31, %v580_v36  ;;  %vm719_vm5 = vcmp.eq.f32.partialorder %v451_v40, %v717_v26 }
  0xda   : > { %v598_v44 = vsel %vm1520_vm10, %v590_v34, %v589_v38  ;;  %v720_v30 = vsel %vm719_vm5, %v694_v48, 0.0 }
  0xdb   : > { %v607_v52 = vsel %vm606_vm14, %v599_v41, %v598_v44  ;;  %v721_v32 = vrot.slane %v720_v30, 4 }
  0xdc   : > { %v616_v56 = vsel %vm615_vm0, %v608_v45, %v607_v52 }
  0xdd   : > { %v625_v60 = vsel %vm624_vm1, %v617_v49, %v616_v56 }
  0xde   : > { %v634_v63 = vsel %vm633_vm2, %v626_v53, %v625_v60 }
  0xdf   : > { %v544_v16 = vld [vmem:[#allocation2 + $0x2] sm:$0x1]  ;;  %v643_v1 = vsel %vm642_vm3, %v635_v57, %v634_v63 }
  0xe0   : > { %v545_v19 = vsel %vm518_vm11, %v544_v16, 0.0  ;;  %v648_v2 = vsub.f32 %v643_v1, %v647_v61  ;;  %v701_v16 = vsub.f32 %v694_v48, %v700_v12 }
  0xe1   : > { %546 = vadd.xlane.f32.xlu1 %v545_v19 }
  0xe2   : > { %v655_v6 = vmul.f32 %v653_v62, %v648_v2  ;;  %v702_v19 = vmul.f32 1.442695, %v701_v16 }
  0xe4   : > { %v656_v8 = vand.u32 2147483647, %v655_v6  ;;  %1018 = vpow2.f32 %v702_v19 }
  0xe5   : > { %557 = vadd.xlane.f32.xlu1 %v556_v21 }
  0xe6   : > { %vm657_vm4 = vcmp.lt.f32.partialorder %v656_v8, 1.0  ;;  %v911_v10 = vadd.f32 -0.5, %v656_v8 }
  0xe7   : > { %v910_v13 = vsel %vm657_vm4, 1.0, %v1217_v28  ;;  %v722_v28 = vadd.f32 %v721_v32, %v720_v30 }
  0xe8   : > { %v660_v14 = vmul.f32 0.5, %v910_v13  ;;  %v663_v15 = vsub.f32 1.0, %v910_v13 }
  0xe9   : > { %681 = vadd.xlane.f32.xlu1 %v680_v33  ;;  %v723_v36 = vrot.slane %v722_v28, 2 }
  0xea   : > { %v661_v17 = vmul.f32 %v660_v14, %v655_v6  ;;  %v665_v18 = vmul.f32 %v911_v10, %v663_v15 }
  0xeb   : > { %v724_v37 = vadd.f32 %v723_v36, %v722_v28 }
  0xec   : > { %v662_v21 = vmul.f32 %v661_v17, %v655_v6 }
  0xed   : > { %741 = vadd.xlane.f32.xlu1 %v740_v25  ;;  %v725_v38 = vrot.slane %v724_v37, 1 }
  0xee   : > { %v666_v22 = vadd.f32 %v665_v18, %v662_v21  ;;  %v1019_v27 = vpop.eup %1018 }
  0xef   : > { %v704_v29 = vrot.slane %v1019_v27, 4  ;;  %v726_v39 = vadd.f32 %v725_v38, %v724_v37 }
  0xf0   : > { %v667_v24 = vsel %vm494_vm9, %v666_v22, 0.0 }
  0xf1   : > { %668 = vadd.xlane.f32.xlu0 %v667_v24  ;;  %v705_v31 = vadd.f32 %v1019_v27, %v704_v29 }
  0xf3   : > { %v706_v33 = vrot.slane %v705_v31, 2 }
  0xf5   : > { %v707_v4 = vadd.f32 %v706_v33, %v705_v31 }
  0xf7   : > { %v708_v34 = vrot.slane %v707_v4, 1 }
  0xf9   : > { %v709_v35 = vadd.f32 %v708_v34, %v707_v4 }
  0xfb   : > { %1020 = vlog2.f32 %v709_v35 }
 0x105   : > { %v1021_v11 = vpop.eup %1020 }
 0x106   : > { %v711_v20 = vmul.f32 0.6931472, %v1021_v11 }
 0x108   : > { %v712_v41 = vadd.f32 %v711_v20, %v700_v12 }
 0x10a   : > { %v728_v5 = vsub.f32 %v712_v41, %v726_v39 }
 0x10c   : > { %v729_v40 = vmul.f32 %v728_v5, %v727_v23 }
 0x10e   : > { %v730_v42 = vsel %vm518_vm11, %v729_v40, 0.0 }
 0x10f   : > { %731 = vadd.xlane.f32.xlu0 %v730_v42 }
 0x156   : > { %v521_v43 = vpop.xlane.xlu0 %520 }
 0x157   : > { %v522_v44 = vrot.slane %v521_v43, 4 }
 0x159   : > { %v523_v45 = vadd.f32 %v522_v44, %v521_v43 }
 0x15a   : > { %v532_v46 = vpop.xlane.xlu0 %531 }
 0x15b   : > { %v524_v47 = vrot.slane %v523_v45, 2  ;;  %v533_v48 = vrot.slane %v532_v46, 4 }
 0x15d   : > { %v534_v49 = vadd.f32 %v533_v48, %v532_v46  ;;  %v525_v50 = vadd.f32 %v524_v47, %v523_v45 }
 0x15f   : > { %v535_v51 = vrot.slane %v534_v49, 2  ;;  %v526_v52 = vrot.slane %v525_v50, 1 }
 0x161   : > { %v527_v53 = vadd.f32 %v526_v52, %v525_v50  ;;  %v536_v54 = vadd.f32 %v535_v51, %v534_v49 }
 0x163   : > { %916 = vpush %v527_v53  ;;  %v537_v55 = vrot.slane %v536_v54, 1 }
 0x165   : > { %v538_v56 = vadd.f32 %v537_v55, %v536_v54 }
 0x167   : > { %918 = vpush %v538_v56 }
 0x16e   : > { %v547_v57 = vpop.xlane.xlu1 %546 }
 0x16f   : > { %v548_v59 = vrot.slane %v547_v57, 4 }
 0x171   : > { %v549_v61 = vadd.f32 %v548_v59, %v547_v57 }
 0x172   : > { %v558_v58 = vpop.xlane.xlu1 %557 }
 0x173   : > { %v559_v60 = vrot.slane %v558_v58, 4  ;;  %v550_v63 = vrot.slane %v549_v61, 2 }
 0x175   : > { %v560_v62 = vadd.f32 %v559_v60, %v558_v58  ;;  %v551_v2 = vadd.f32 %v550_v63, %v549_v61 }
 0x176   : > { %v682_v13 = vpop.xlane.xlu1 %681 }
 0x177   : > { %v561_v0 = vrot.slane %v560_v62, 2  ;;  %v552_v6 = vrot.slane %v551_v2, 1  ;;  %v683_v15 = vrot.slane %v682_v13, 4 }
 0x179   : > { %v562_v3 = vadd.f32 %v561_v0, %v560_v62  ;;  %v553_v9 = vadd.f32 %v552_v6, %v551_v2  ;;  %v684_v17 = vadd.f32 %v683_v15, %v682_v13 }
 0x17a   : > { %v742_v31 = vpop.xlane.xlu1 %741 }
 0x17b   : > { %v563_v7 = vrot.slane %v562_v3, 1  ;;  %v685_v19 = vrot.slane %v684_v17, 2  ;;  %v743_v33 = vrot.slane %v742_v31, 4 }
 0x17d   : > { %v564_v10 = vadd.f32 %v563_v7, %v562_v3  ;;  %v686_v23 = vadd.f32 %v685_v19, %v684_v17  ;;  %v744_v28 = vadd.f32 %v743_v33, %v742_v31 }
 0x17e   : > { %v669_v12 = vpop.xlane.xlu0 %668 }
 0x17f   : > { %v670_v14 = vrot.slane %v669_v12, 4  ;;  %v687_v25 = vrot.slane %v686_v23, 1  ;;  %v745_v35 = vrot.slane %v744_v28, 2 }
 0x181   : > { %v671_v16 = vadd.f32 %v670_v14, %v669_v12  ;;  %v688_v29 = vadd.f32 %v687_v25, %v686_v23  ;;  %v746_v38 = vadd.f32 %v745_v35, %v744_v28 }
 0x183   : > { %v672_v18 = vrot.slane %v671_v16, 2  ;;  %v747_v20 = vrot.slane %v746_v38, 1 }
 0x185   : > { %v673_v22 = vadd.f32 %v672_v18, %v671_v16  ;;  %v748_v5 = vadd.f32 %v747_v20, %v746_v38 }
 0x187   : > { %v674_v24 = vrot.slane %v673_v22, 1 }
 0x189   : > { %v675_v27 = vadd.f32 %v674_v24, %v673_v22 }
 0x194   : > { %s917_s21 = spop %916 }
 0x198   : > { %s919_s10 = spop %918 }
 0x199   : > { %v540_v1 = vstv %s919_s10 }
 0x19a   : > { %1022 = vrcp.f32 %v540_v1 }
 0x19c   : > { %v732_v30 = vpop.xlane.xlu0 %731 }
 0x19d   : > { %v733_v32 = vrot.slane %v732_v30, 4 }
 0x19f   : > { %v734_v4 = vadd.f32 %v733_v32, %v732_v30 }
 0x1a1   : > { %v735_v34 = vrot.slane %v734_v4, 2 }
 0x1a3   : > { %v736_v37 = vadd.f32 %v735_v34, %v734_v4 }
 0x1a4   : > { %v1023_v8 = vpop.eup %1022 }
 0x1a5   : > { %920 = vpush %v1023_v8  ;;  %v737_v11 = vrot.slane %v736_v37, 1 }
 0x1a6   : > { %922 = vpush %v553_v9 }
 0x1a7   : > { %924 = vpush %v564_v10  ;;  %v738_v41 = vadd.f32 %v737_v11, %v736_v37 }
 0x1d6   : > { %s921_s25 = spop %920 }
 0x1d7   : > { %s543_s17 = smul.f32 %s921_s25, %s917_s21  ;;  %s923_s29 = spop %922 }
 0x1d8   : > { %s925_s9 = spop %924 }
 0x1d9   : > { %768 = sst [smem:[#allocation11 + $0x5]] %s543_s17  ;;  %v566_v21 = vstv %s925_s9 }
 0x1da   : > { %1024 = vrcp.f32 %v566_v21 }
 0x1e4   : > { %v1025_v26 = vpop.eup %1024 }
 0x1e5   : > { %926 = vpush %v1025_v26 }
 0x1e6   : > { %928 = vpush %v675_v27 }
 0x1e7   : > { %930 = vpush %v688_v29 }
 0x216   : > { %s927_s26 = spop %926 }
 0x217   : > { %s1551_s16 = smul.f32 %s927_s26, %s923_s29  ;;  %s929_s20 = spop %928 }
 0x218   : > { %s931_s23 = spop %930 }
 0x219   : > { %758 = sst [smem:[#allocation11]] %s1551_s16  ;;  %v690_v36 = vstv %s931_s23 }
 0x21a   : > { %760 = sst [smem:[#allocation11 + $0x1]] %s1551_s16  ;;  %1026 = vrcp.f32 %v690_v36 }
 0x21b   : > { %s754_s11 = sadd.f32 %s1551_s16, %s1551_s16 }
 0x224   : > { %v1027_v39 = vpop.eup %1026 }
 0x225   : > { %932 = vpush %v1027_v39 }
 0x226   : > { %934 = vpush %v738_v41 }
 0x227   : > { %936 = vpush %v748_v5 }
 0x256   : > { %s933_s12 = spop %932 }
 0x257   : > { %s693_s19 = smul.f32 %s933_s12, %s929_s20  ;;  %s935_s15 = spop %934 }
 0x258   : > { %s937_s14 = spop %936 }
 0x259   : > { %v750_v40 = vstv %s937_s14  ;;  %762 = sst [smem:[#allocation11 + $0x2]] %s693_s19 }
 0x25a   : > { %1028 = vrcp.f32 %v750_v40  ;;  %s755_s27 = sadd.f32 %s754_s11, %s693_s19 }
 0x264   : > { %v1029_v42 = vpop.eup %1028 }
 0x265   : > { %938 = vpush %v1029_v42 }
 0x296   : > { %s939_s22 = spop %938 }
 0x297   : > { %s753_s1 = smul.f32 %s939_s22, %s935_s15 }
 0x299   : > { %s756_s8 = sadd.f32 %s755_s27, %s753_s1 }
 0x29a   : > { %764 = sst [smem:[#allocation11 + $0x3]] %s753_s1 }
 0x29b   : > { %766 = sst [smem:[#allocation11 + $0x4]] %s756_s8 }
 0x29c PF: > { %p971_p1 = scmp.eq.s32.totalorder %s1350_s24, 2  ;;  %s1624_s21 = sld [smem:[#allocation20_spill]] }
 0x2a2   : > { %s1148_s10 = scalar_lea.hbm %s1624_s21, 16 }
 0x2a3   : > { %p1149_p7 = scmp.ne.s32.totalorder %s1624_s21, %s1148_s10  ;;  %p1154_p8 = scmp.lt.u32.totalorder %s1148_s10, %s1624_s21 }
 0x2a5   : > { %p1150_p2 = pnand %p1149_p7, %p971_p1 }
 0x2a7   : > { %p1151_p3 = pneg %p1150_p2 }
 0x2a9   : > { %p1156_p9 = pnand %p1154_p8, %p1151_p3 }
 0x2ab   : > { %1159 = shalt.err (!%p1156_p9)
}
 0x2ac   : > { %s1219_s26 = smov [#allocation11]  }
 0x2ad   : > { %951 = dma.smem_to_hbm (%p971_p1), %s1219_s26, 16, %s1624_s21, [#allocation5]  }
 0x2ae   : > { %1189 = dma.done.wait (%p971_p1), [#allocation5], 16  }
 0x2af   : > { %1191 = vsyncadd (%p971_p1), [#allocation5], 4294967280 }
 0x2b0   : > { %786 = sfence }
 0x2b1 PF: > { %s1625_s30 = sld [smem:[#allocation17_spill]]  ;;  %s1626_s24 = sld [smem:[#allocation16_spill]] }
 0x2b2   : > { %s1627_s29 = sld [smem:[#allocation18_spill]]  ;;  %s1628_s27 = smov %s1198_s28 }
 0x2b7   : > { %p23_p11 = scmp.ge.s32.totalorder %s1625_s30, 5   ;;  %s1629_s28 = smov %s1626_s24 }
 0x2b9   :  { %25 = sbr.rel (!%p23_p11) target bundleno = 10 (0xa), region = 136 }
 0x2c0   :  { %792 = vsyncpa [#allocation4], 1 }
 0x2c1   :  { %794 = vsyncpa [#allocation4 + $0x1], 1 }
 0x2c2   :  { %795 = vsyncpa [#allocation7], 1 }
 0x2c3   :  { %797 = vsyncpa [#allocation7 + $0x1], 1 }
 0x2c4   :  { %798 = vsyncpa [#allocation10], 1 }
 0x2c5   :  { %799 = vsyncpa [#allocation5], 1 }
 0x2c6   :  { %801 = vsyncpa [#allocation5 + $0x1], 1 }

</bundles_post_ra>
